<compile_context>
chip_gen: v6e
topology: v6e:2x2x1
jax: 0.10.0
libtpu: 0.0.40
codegen_flags: <defaults>
</compile_context>

<pallas_src>
import jax
import jax.numpy as jnp
from jax.experimental import pallas as pl
from jax.experimental.pallas import tpu as pltpu


def _round_up(x: int, m: int) -> int:
    return (x + m - 1) // m * m


def _mlp_kernel(x_ref, w1_ref, b1_ref, w2_ref, b2_ref,
                w3_ref, b3_ref, w4_ref, b4_ref, o_ref):
    """Fused 4-layer MLP (3 ReLUs) on one lane-dense tile of rows.

    x_ref : (n_x, tile_m)   features on sublanes, batch on the 128-lane axis.
    wK_ref: (out_k, in_k)   PyTorch nn.Linear weight layout.
    bK_ref: (out_k, 1)      broadcasts across the lane (batch) axis.
    All matmuls hit the MXU with f32 accumulation; every intermediate is
    (out_k, tile_m), so VPU ops and the output store are full-lane-width.
    """
    x = x_ref[...]
    h = jnp.dot(w1_ref[...], x, preferred_element_type=jnp.float32) + b1_ref[...]
    h = jnp.maximum(h, 0.0)
    h = jnp.dot(w2_ref[...], h, preferred_element_type=jnp.float32) + b2_ref[...]
    h = jnp.maximum(h, 0.0)
    h = jnp.dot(w3_ref[...], h, preferred_element_type=jnp.float32) + b3_ref[...]
    h = jnp.maximum(h, 0.0)
    o = jnp.dot(w4_ref[...], h, preferred_element_type=jnp.float32) + b4_ref[...]
    o_ref[...] = o.astype(o_ref.dtype)


def _choose_tile_m(n_obs, n_x, n_y, *, max_tile=8192, vmem_budget_bytes=8 << 20):
    """Pick a lane-dense row tile (multiple of 128).

    Only the double-buffered X^T and out^T tiles scale with tile_m (weights
    are a few KB), so tile_m is capped by a conservative VMEM budget that fits
    the default scoped VMEM on v5e/v6e/v7x.  Big tiles amortize per-grid-step
    overhead on this HBM-bound kernel; the cap keeps >= 2 parallel steps when
    there is enough work so v7x can use both TensorCores.
    """
    lane = 128
    per_row = 2 * (n_x + n_y) * 4                    # double-buffered f32 tiles
    cap = max(lane, (vmem_budget_bytes // per_row) // lane * lane)
    tile = min(max_tile, cap)
    tile = min(tile, _round_up(n_obs, lane))         # don't pad tiny batches up
    if n_obs > lane:
        # Keep at least 2 grid steps -> rows shard across both v7x TCs.
        tile = min(tile, _round_up((n_obs + 1) // 2, lane))
    return max(tile, lane)


def _build_pallas_call(n_x, h1, h2, n_y, n_pad, tile_m, dtype,
                       single_buffer_weights):
    # Weights/biases never change across grid steps: single-buffer them to
    # save VMEM and per-step DMA descriptors (caller provides a fallback).
    def const_spec(shape):
        if single_buffer_weights:
            return pl.BlockSpec(shape, lambda i: (0, 0),
                                pipeline_mode=pl.Buffered(1))
        return pl.BlockSpec(shape, lambda i: (0, 0))

    weight_elems = n_x * h1 + h1 * h2 + h2 * n_y + n_y * n_y
    flops = 2 * n_pad * weight_elems
    bytes_accessed = 4 * (n_pad * (n_x + n_y) + weight_elems
                          + h1 + h2 + 2 * n_y)

    return pl.pallas_call(
        _mlp_kernel,
        out_shape=jax.ShapeDtypeStruct((n_y, n_pad), dtype),
        grid_spec=pltpu.PrefetchScalarGridSpec(
            num_scalar_prefetch=0,
            grid=(n_pad // tile_m,),
            in_specs=[
                pl.BlockSpec((n_x, tile_m), lambda i: (0, i)),  # X^T row tile
                const_spec((h1, n_x)), const_spec((h1, 1)),
                const_spec((h2, h1)), const_spec((h2, 1)),
                const_spec((n_y, h2)), const_spec((n_y, 1)),
                const_spec((n_y, n_y)), const_spec((n_y, 1)),
            ],
            out_specs=pl.BlockSpec((n_y, tile_m), lambda i: (0, i)),
        ),
        compiler_params=pltpu.CompilerParams(
            dimension_semantics=("parallel",),     # shard rows across TCs (v7x)
        ),
        cost_estimate=pl.CostEstimate(
            flops=flops, transcendentals=0, bytes_accessed=bytes_accessed),
    )


def synthetic3layer_forward(X, params, *, tile_m=None):
    """X: (n_obs, n_x) f32.  params: w{k} of shape (out,in), b{k} of (out,1)."""
    n_obs, n_x = X.shape
    w1, b1 = params["w1"], params["b1"]
    w2, b2 = params["w2"], params["b2"]
    w3, b3 = params["w3"], params["b3"]
    w4, b4 = params["w4"], params["b4"]
    h1, h2, n_y = w1.shape[0], w2.shape[0], w4.shape[0]

    if tile_m is None:
        tile_m = _choose_tile_m(n_obs, n_x, n_y)
    assert tile_m % 128 == 0, "tile_m must be a multiple of 128 (lane width)"

    # Pad the batch to a multiple of tile_m (costs at most one extra step) and
    # put it on the lane axis.  Layout plumbing only — callers that already
    # hold X feature-major can feed it straight through without this copy.
    n_pad = _round_up(n_obs, tile_m)
    xT = jnp.pad(X, ((0, n_pad - n_obs), (0, 0))).T          # (n_x, n_pad)

    args = (xT, w1, b1, w2, b2, w3, b3, w4, b4)
    try:
        outT = _build_pallas_call(n_x, h1, h2, n_y, n_pad, tile_m, X.dtype,
                                  single_buffer_weights=True)(*args)
    except Exception:
        # pipeline_mode=pl.Buffered(1) unsupported on this JAX build: weights
        # are only a few KB, so default double-buffering is a harmless fallback.
        outT = _build_pallas_call(n_x, h1, h2, n_y, n_pad, tile_m, X.dtype,
                                  single_buffer_weights=False)(*args)

    return outT[:, :n_obs].T                                  # (n_obs, n_y)


def init_params(n_x, n_y, seed=0):
    """nn.Linear-style init: W (out,in), b (out,1), U(-1/sqrt(fan_in), +)."""
    h1 = int(0.5 * (n_x + n_y))
    h2 = int(0.6 * (n_x + n_y))
    dims = [(n_x, h1), (h1, h2), (h2, n_y), (n_y, n_y)]
    key = jax.random.PRNGKey(seed)
    params = {}
    for idx, (fan_in, fan_out) in enumerate(dims, start=1):
        key, kw, kb = jax.random.split(key, 3)
        bound = 1.0 / jnp.sqrt(jnp.float32(fan_in))
        params[f"w{idx}"] = jax.random.uniform(
            kw, (fan_out, fan_in), jnp.float32, -bound, bound)
        params[f"b{idx}"] = jax.random.uniform(
            kb, (fan_out, 1), jnp.float32, -bound, bound)
    return params


def reference_forward(X, params):
    h = jnp.maximum(X @ params["w1"].T + params["b1"].T, 0.0)
    h = jnp.maximum(h @ params["w2"].T + params["b2"].T, 0.0)
    h = jnp.maximum(h @ params["w3"].T + params["b3"].T, 0.0)
    return h @ params["w4"].T + params["b4"].T


if __name__ == "__main__":
    n_x, n_y = 16, 8                      # small shapes consistent with module
    params = init_params(n_x, n_y, seed=0)

    # Small batch: single 128-row tile, grid=(1,).
    X = jax.random.normal(jax.random.PRNGKey(0), (16, n_x), jnp.float32)
    out = jax.block_until_ready(synthetic3layer_forward(X, params))
    ref = reference_forward(X, params)
    assert out.shape == (16, n_y)
    assert jnp.allclose(out, ref, atol=2e-5, rtol=2e-5), "mismatch vs reference"

    # Ragged batch (not a multiple of 128): exercises wrapper padding, the
    # multi-step parallel grid (tile_m=256, grid=(2,)) and the tail slicing.
    X2 = jax.random.normal(jax.random.PRNGKey(1), (300, n_x), jnp.float32)
    out2 = jax.block_until_ready(synthetic3layer_forward(X2, params))
    ref2 = reference_forward(X2, params)
    assert out2.shape == (300, n_y)
    assert jnp.allclose(out2, ref2, atol=2e-5, rtol=2e-5), "mismatch vs reference"

    print("KERNEL_OK")
</pallas_src>

<mosaic_0001>
module attributes {stable_mosaic.version = 11 : i64} {
  func.func @_mlp_kernel(%arg0: i32, %arg1: memref<16x128xf32, #tpu.memory_space<vmem>>, %arg2: memref<12x16xf32, #tpu.memory_space<vmem>>, %arg3: memref<12x1xf32, #tpu.memory_space<vmem>>, %arg4: memref<14x12xf32, #tpu.memory_space<vmem>>, %arg5: memref<14x1xf32, #tpu.memory_space<vmem>>, %arg6: memref<8x14xf32, #tpu.memory_space<vmem>>, %arg7: memref<8x1xf32, #tpu.memory_space<vmem>>, %arg8: memref<8x8xf32, #tpu.memory_space<vmem>>, %arg9: memref<8x1xf32, #tpu.memory_space<vmem>>, %arg10: memref<8x128xf32, #tpu.memory_space<vmem>>) attributes {dimension_semantics = [#tpu.dimension_semantics<parallel>], iteration_bounds = array<i64: 1>, scalar_prefetch = 0 : i64, scratch_operands = 0 : i64, tpu.core_type = #tpu.core_type<tc>, window_params = [{transform_indices = @transform_0, window_bounds = array<i64: 16, 128>}, {pipeline_mode = #tpu.pipeline_mode<synchronous>, transform_indices = @transform_1, window_bounds = array<i64: 12, 16>}, {pipeline_mode = #tpu.pipeline_mode<synchronous>, transform_indices = @transform_2, window_bounds = array<i64: 12, 1>}, {pipeline_mode = #tpu.pipeline_mode<synchronous>, transform_indices = @transform_3, window_bounds = array<i64: 14, 12>}, {pipeline_mode = #tpu.pipeline_mode<synchronous>, transform_indices = @transform_4, window_bounds = array<i64: 14, 1>}, {pipeline_mode = #tpu.pipeline_mode<synchronous>, transform_indices = @transform_5, window_bounds = array<i64: 8, 14>}, {pipeline_mode = #tpu.pipeline_mode<synchronous>, transform_indices = @transform_6, window_bounds = array<i64: 8, 1>}, {pipeline_mode = #tpu.pipeline_mode<synchronous>, transform_indices = @transform_7, window_bounds = array<i64: 8, 8>}, {pipeline_mode = #tpu.pipeline_mode<synchronous>, transform_indices = @transform_8, window_bounds = array<i64: 8, 1>}, {transform_indices = @transform_9, window_bounds = array<i64: 8, 128>}]} {
    %c0 = arith.constant 0 : index
    %c0_0 = arith.constant 0 : index
    %0 = vector.load %arg1[%c0, %c0_0] : memref<16x128xf32, #tpu.memory_space<vmem>>, vector<16x128xf32>
    %c0_1 = arith.constant 0 : index
    %c0_2 = arith.constant 0 : index
    %1 = vector.load %arg2[%c0_1, %c0_2] : memref<12x16xf32, #tpu.memory_space<vmem>>, vector<12x16xf32>
    %cst = arith.constant dense<0.000000e+00> : vector<12x128xf32>
    %2 = tpu.matmul %1, %0, %cst {dimension_numbers = #tpu.dot_dimension_numbers<[1], [0], [0], [1], [0, 0, 1, 1], [], []>} : vector<12x16xf32>, vector<16x128xf32>, vector<12x128xf32> -> vector<12x128xf32>
    %c0_3 = arith.constant 0 : index
    %c0_4 = arith.constant 0 : index
    %3 = vector.load %arg3[%c0_3, %c0_4] : memref<12x1xf32, #tpu.memory_space<vmem>>, vector<12x1xf32>
    %4 = vector.broadcast %3 : vector<12x1xf32> to vector<12x128xf32>
    %5 = arith.addf %2, %4 : vector<12x128xf32>
    %cst_5 = arith.constant 0.000000e+00 : f32
    %6 = vector.broadcast %cst_5 : f32 to vector<12x128xf32>
    %7 = arith.maximumf %5, %6 : vector<12x128xf32>
    %c0_6 = arith.constant 0 : index
    %c0_7 = arith.constant 0 : index
    %8 = vector.load %arg4[%c0_6, %c0_7] : memref<14x12xf32, #tpu.memory_space<vmem>>, vector<14x12xf32>
    %cst_8 = arith.constant dense<0.000000e+00> : vector<14x128xf32>
    %9 = tpu.matmul %8, %7, %cst_8 {dimension_numbers = #tpu.dot_dimension_numbers<[1], [0], [0], [1], [0, 0, 1, 1], [], []>} : vector<14x12xf32>, vector<12x128xf32>, vector<14x128xf32> -> vector<14x128xf32>
    %c0_9 = arith.constant 0 : index
    %c0_10 = arith.constant 0 : index
    %10 = vector.load %arg5[%c0_9, %c0_10] : memref<14x1xf32, #tpu.memory_space<vmem>>, vector<14x1xf32>
    %11 = vector.broadcast %10 : vector<14x1xf32> to vector<14x128xf32>
    %12 = arith.addf %9, %11 : vector<14x128xf32>
    %cst_11 = arith.constant 0.000000e+00 : f32
    %13 = vector.broadcast %cst_11 : f32 to vector<14x128xf32>
    %14 = arith.maximumf %12, %13 : vector<14x128xf32>
    %c0_12 = arith.constant 0 : index
    %c0_13 = arith.constant 0 : index
    %15 = vector.load %arg6[%c0_12, %c0_13] : memref<8x14xf32, #tpu.memory_space<vmem>>, vector<8x14xf32>
    %cst_14 = arith.constant dense<0.000000e+00> : vector<8x128xf32>
    %16 = tpu.matmul %15, %14, %cst_14 {dimension_numbers = #tpu.dot_dimension_numbers<[1], [0], [0], [1], [0, 0, 1, 1], [], []>} : vector<8x14xf32>, vector<14x128xf32>, vector<8x128xf32> -> vector<8x128xf32>
    %c0_15 = arith.constant 0 : index
    %c0_16 = arith.constant 0 : index
    %17 = vector.load %arg7[%c0_15, %c0_16] : memref<8x1xf32, #tpu.memory_space<vmem>>, vector<8x1xf32>
    %18 = vector.broadcast %17 : vector<8x1xf32> to vector<8x128xf32>
    %19 = arith.addf %16, %18 : vector<8x128xf32>
    %cst_17 = arith.constant 0.000000e+00 : f32
    %20 = vector.broadcast %cst_17 : f32 to vector<8x128xf32>
    %21 = arith.maximumf %19, %20 : vector<8x128xf32>
    %c0_18 = arith.constant 0 : index
    %c0_19 = arith.constant 0 : index
    %22 = vector.load %arg8[%c0_18, %c0_19] : memref<8x8xf32, #tpu.memory_space<vmem>>, vector<8x8xf32>
    %cst_20 = arith.constant dense<0.000000e+00> : vector<8x128xf32>
    %23 = tpu.matmul %22, %21, %cst_20 {dimension_numbers = #tpu.dot_dimension_numbers<[1], [0], [0], [1], [0, 0, 1, 1], [], []>} : vector<8x8xf32>, vector<8x128xf32>, vector<8x128xf32> -> vector<8x128xf32>
    %c0_21 = arith.constant 0 : index
    %c0_22 = arith.constant 0 : index
    %24 = vector.load %arg9[%c0_21, %c0_22] : memref<8x1xf32, #tpu.memory_space<vmem>>, vector<8x1xf32>
    %25 = vector.broadcast %24 : vector<8x1xf32> to vector<8x128xf32>
    %26 = arith.addf %23, %25 : vector<8x128xf32>
    %c0_23 = arith.constant 0 : index
    %c0_24 = arith.constant 0 : index
    %27 = vector.load %arg10[%c0_23, %c0_24] : memref<8x128xf32, #tpu.memory_space<vmem>>, vector<8x128xf32>
    tpu.vector_store %arg10[%c0_23, %c0_24], %26 {strides = array<i32>} : memref<8x128xf32, #tpu.memory_space<vmem>>, vector<8x128xf32>,
    return
  }
  func.func @transform_0(%arg0: i32) -> (i32, i32) {
    %c0_i32 = arith.constant 0 : i32
    %c0_i32_0 = arith.constant 0 : i32
    return %c0_i32, %arg0 : i32, i32
  }
  func.func @transform_1(%arg0: i32) -> (i32, i32) {
    %c0_i32 = arith.constant 0 : i32
    %c0_i32_0 = arith.constant 0 : i32
    %c0_i32_1 = arith.constant 0 : i32
    return %c0_i32, %c0_i32_0 : i32, i32
  }
  func.func @transform_2(%arg0: i32) -> (i32, i32) {
    %c0_i32 = arith.constant 0 : i32
    %c0_i32_0 = arith.constant 0 : i32
    %c0_i32_1 = arith.constant 0 : i32
    return %c0_i32, %c0_i32_0 : i32, i32
  }
  func.func @transform_3(%arg0: i32) -> (i32, i32) {
    %c0_i32 = arith.constant 0 : i32
    %c0_i32_0 = arith.constant 0 : i32
    %c0_i32_1 = arith.constant 0 : i32
    return %c0_i32, %c0_i32_0 : i32, i32
  }
  func.func @transform_4(%arg0: i32) -> (i32, i32) {
    %c0_i32 = arith.constant 0 : i32
    %c0_i32_0 = arith.constant 0 : i32
    %c0_i32_1 = arith.constant 0 : i32
    return %c0_i32, %c0_i32_0 : i32, i32
  }
  func.func @transform_5(%arg0: i32) -> (i32, i32) {
    %c0_i32 = arith.constant 0 : i32
    %c0_i32_0 = arith.constant 0 : i32
    %c0_i32_1 = arith.constant 0 : i32
    return %c0_i32, %c0_i32_0 : i32, i32
  }
  func.func @transform_6(%arg0: i32) -> (i32, i32) {
    %c0_i32 = arith.constant 0 : i32
    %c0_i32_0 = arith.constant 0 : i32
    %c0_i32_1 = arith.constant 0 : i32
    return %c0_i32, %c0_i32_0 : i32, i32
  }
  func.func @transform_7(%arg0: i32) -> (i32, i32) {
    %c0_i32 = arith.constant 0 : i32
    %c0_i32_0 = arith.constant 0 : i32
    %c0_i32_1 = arith.constant 0 : i32
    return %c0_i32, %c0_i32_0 : i32, i32
  }
  func.func @transform_8(%arg0: i32) -> (i32, i32) {
    %c0_i32 = arith.constant 0 : i32
    %c0_i32_0 = arith.constant 0 : i32
    %c0_i32_1 = arith.constant 0 : i32
    return %c0_i32, %c0_i32_0 : i32, i32
  }
  func.func @transform_9(%arg0: i32) -> (i32, i32) {
    %c0_i32 = arith.constant 0 : i32
    %c0_i32_0 = arith.constant 0 : i32
    return %c0_i32, %arg0 : i32, i32
  }
}

module attributes {stable_mosaic.version = 11 : i64} {
  func.func @_mlp_kernel(%arg0: i32, %arg1: memref<16x128xf32, #tpu.memory_space<vmem>>, %arg2: memref<12x16xf32, #tpu.memory_space<vmem>>, %arg3: memref<12x1xf32, #tpu.memory_space<vmem>>, %arg4: memref<14x12xf32, #tpu.memory_space<vmem>>, %arg5: memref<14x1xf32, #tpu.memory_space<vmem>>, %arg6: memref<8x14xf32, #tpu.memory_space<vmem>>, %arg7: memref<8x1xf32, #tpu.memory_space<vmem>>, %arg8: memref<8x8xf32, #tpu.memory_space<vmem>>, %arg9: memref<8x1xf32, #tpu.memory_space<vmem>>, %arg10: memref<8x128xf32, #tpu.memory_space<vmem>>) attributes {dimension_semantics = [#tpu.dimension_semantics<parallel>], iteration_bounds = array<i64: 1>, scalar_prefetch = 0 : i64, scratch_operands = 0 : i64, tpu.core_type = #tpu.core_type<tc>, window_params = [{transform_indices = @transform_0, window_bounds = array<i64: 16, 128>}, {pipeline_mode = #tpu.pipeline_mode<synchronous>, transform_indices = @transform_1, window_bounds = array<i64: 12, 16>}, {pipeline_mode = #tpu.pipeline_mode<synchronous>, transform_indices = @transform_2, window_bounds = array<i64: 12, 1>}, {pipeline_mode = #tpu.pipeline_mode<synchronous>, transform_indices = @transform_3, window_bounds = array<i64: 14, 12>}, {pipeline_mode = #tpu.pipeline_mode<synchronous>, transform_indices = @transform_4, window_bounds = array<i64: 14, 1>}, {pipeline_mode = #tpu.pipeline_mode<synchronous>, transform_indices = @transform_5, window_bounds = array<i64: 8, 14>}, {pipeline_mode = #tpu.pipeline_mode<synchronous>, transform_indices = @transform_6, window_bounds = array<i64: 8, 1>}, {pipeline_mode = #tpu.pipeline_mode<synchronous>, transform_indices = @transform_7, window_bounds = array<i64: 8, 8>}, {pipeline_mode = #tpu.pipeline_mode<synchronous>, transform_indices = @transform_8, window_bounds = array<i64: 8, 1>}, {transform_indices = @transform_9, window_bounds = array<i64: 8, 128>}]} {
    %c0 = arith.constant 0 : index
    %c0_0 = arith.constant 0 : index
    %0 = vector.load %arg1[%c0, %c0_0] : memref<16x128xf32, #tpu.memory_space<vmem>>, vector<16x128xf32>
    %c0_1 = arith.constant 0 : index
    %c0_2 = arith.constant 0 : index
    %1 = vector.load %arg2[%c0_1, %c0_2] : memref<12x16xf32, #tpu.memory_space<vmem>>, vector<12x16xf32>
    %cst = arith.constant dense<0.000000e+00> : vector<12x128xf32>
    %2 = tpu.matmul %1, %0, %cst {dimension_numbers = #tpu.dot_dimension_numbers<[1], [0], [0], [1], [0, 0, 1, 1], [], []>} : vector<12x16xf32>, vector<16x128xf32>, vector<12x128xf32> -> vector<12x128xf32>
    %c0_3 = arith.constant 0 : index
    %c0_4 = arith.constant 0 : index
    %3 = vector.load %arg3[%c0_3, %c0_4] : memref<12x1xf32, #tpu.memory_space<vmem>>, vector<12x1xf32>
    %4 = vector.broadcast %3 : vector<12x1xf32> to vector<12x128xf32>
    %5 = arith.addf %2, %4 : vector<12x128xf32>
    %cst_5 = arith.constant 0.000000e+00 : f32
    %6 = vector.broadcast %cst_5 : f32 to vector<12x128xf32>
    %7 = arith.maximumf %5, %6 : vector<12x128xf32>
    %c0_6 = arith.constant 0 : index
    %c0_7 = arith.constant 0 : index
    %8 = vector.load %arg4[%c0_6, %c0_7] : memref<14x12xf32, #tpu.memory_space<vmem>>, vector<14x12xf32>
    %cst_8 = arith.constant dense<0.000000e+00> : vector<14x128xf32>
    %9 = tpu.matmul %8, %7, %cst_8 {dimension_numbers = #tpu.dot_dimension_numbers<[1], [0], [0], [1], [0, 0, 1, 1], [], []>} : vector<14x12xf32>, vector<12x128xf32>, vector<14x128xf32> -> vector<14x128xf32>
    %c0_9 = arith.constant 0 : index
    %c0_10 = arith.constant 0 : index
    %10 = vector.load %arg5[%c0_9, %c0_10] : memref<14x1xf32, #tpu.memory_space<vmem>>, vector<14x1xf32>
    %11 = vector.broadcast %10 : vector<14x1xf32> to vector<14x128xf32>
    %12 = arith.addf %9, %11 : vector<14x128xf32>
    %cst_11 = arith.constant 0.000000e+00 : f32
    %13 = vector.broadcast %cst_11 : f32 to vector<14x128xf32>
    %14 = arith.maximumf %12, %13 : vector<14x128xf32>
    %c0_12 = arith.constant 0 : index
    %c0_13 = arith.constant 0 : index
    %15 = vector.load %arg6[%c0_12, %c0_13] : memref<8x14xf32, #tpu.memory_space<vmem>>, vector<8x14xf32>
    %cst_14 = arith.constant dense<0.000000e+00> : vector<8x128xf32>
    %16 = tpu.matmul %15, %14, %cst_14 {dimension_numbers = #tpu.dot_dimension_numbers<[1], [0], [0], [1], [0, 0, 1, 1], [], []>} : vector<8x14xf32>, vector<14x128xf32>, vector<8x128xf32> -> vector<8x128xf32>
    %c0_15 = arith.constant 0 : index
    %c0_16 = arith.constant 0 : index
    %17 = vector.load %arg7[%c0_15, %c0_16] : memref<8x1xf32, #tpu.memory_space<vmem>>, vector<8x1xf32>
    %18 = vector.broadcast %17 : vector<8x1xf32> to vector<8x128xf32>
    %19 = arith.addf %16, %18 : vector<8x128xf32>
    %cst_17 = arith.constant 0.000000e+00 : f32
    %20 = vector.broadcast %cst_17 : f32 to vector<8x128xf32>
    %21 = arith.maximumf %19, %20 : vector<8x128xf32>
    %c0_18 = arith.constant 0 : index
    %c0_19 = arith.constant 0 : index
    %22 = vector.load %arg8[%c0_18, %c0_19] : memref<8x8xf32, #tpu.memory_space<vmem>>, vector<8x8xf32>
    %cst_20 = arith.constant dense<0.000000e+00> : vector<8x128xf32>
    %23 = tpu.matmul %22, %21, %cst_20 {dimension_numbers = #tpu.dot_dimension_numbers<[1], [0], [0], [1], [0, 0, 1, 1], [], []>} : vector<8x8xf32>, vector<8x128xf32>, vector<8x128xf32> -> vector<8x128xf32>
    %c0_21 = arith.constant 0 : index
    %c0_22 = arith.constant 0 : index
    %24 = vector.load %arg9[%c0_21, %c0_22] : memref<8x1xf32, #tpu.memory_space<vmem>>, vector<8x1xf32>
    %25 = vector.broadcast %24 : vector<8x1xf32> to vector<8x128xf32>
    %26 = arith.addf %23, %25 : vector<8x128xf32>
    %c0_23 = arith.constant 0 : index
    %c0_24 = arith.constant 0 : index
    %27 = vector.load %arg10[%c0_23, %c0_24] : memref<8x128xf32, #tpu.memory_space<vmem>>, vector<8x128xf32>
    tpu.vector_store %arg10[%c0_23, %c0_24], %26 {strides = array<i32>} : memref<8x128xf32, #tpu.memory_space<vmem>>, vector<8x128xf32>,
    return
  }
  func.func @transform_0(%arg0: i32) -> (i32, i32) {
    %c0_i32 = arith.constant 0 : i32
    %c0_i32_0 = arith.constant 0 : i32
    return %c0_i32, %arg0 : i32, i32
  }
  func.func @transform_1(%arg0: i32) -> (i32, i32) {
    %c0_i32 = arith.constant 0 : i32
    %c0_i32_0 = arith.constant 0 : i32
    %c0_i32_1 = arith.constant 0 : i32
    return %c0_i32, %c0_i32_0 : i32, i32
  }
  func.func @transform_2(%arg0: i32) -> (i32, i32) {
    %c0_i32 = arith.constant 0 : i32
    %c0_i32_0 = arith.constant 0 : i32
    %c0_i32_1 = arith.constant 0 : i32
    return %c0_i32, %c0_i32_0 : i32, i32
  }
  func.func @transform_3(%arg0: i32) -> (i32, i32) {
    %c0_i32 = arith.constant 0 : i32
    %c0_i32_0 = arith.constant 0 : i32
    %c0_i32_1 = arith.constant 0 : i32
    return %c0_i32, %c0_i32_0 : i32, i32
  }
  func.func @transform_4(%arg0: i32) -> (i32, i32) {
    %c0_i32 = arith.constant 0 : i32
    %c0_i32_0 = arith.constant 0 : i32
    %c0_i32_1 = arith.constant 0 : i32
    return %c0_i32, %c0_i32_0 : i32, i32
  }
  func.func @transform_5(%arg0: i32) -> (i32, i32) {
    %c0_i32 = arith.constant 0 : i32
    %c0_i32_0 = arith.constant 0 : i32
    %c0_i32_1 = arith.constant 0 : i32
    return %c0_i32, %c0_i32_0 : i32, i32
  }
  func.func @transform_6(%arg0: i32) -> (i32, i32) {
    %c0_i32 = arith.constant 0 : i32
    %c0_i32_0 = arith.constant 0 : i32
    %c0_i32_1 = arith.constant 0 : i32
    return %c0_i32, %c0_i32_0 : i32, i32
  }
  func.func @transform_7(%arg0: i32) -> (i32, i32) {
    %c0_i32 = arith.constant 0 : i32
    %c0_i32_0 = arith.constant 0 : i32
    %c0_i32_1 = arith.constant 0 : i32
    return %c0_i32, %c0_i32_0 : i32, i32
  }
  func.func @transform_8(%arg0: i32) -> (i32, i32) {
    %c0_i32 = arith.constant 0 : i32
    %c0_i32_0 = arith.constant 0 : i32
    %c0_i32_1 = arith.constant 0 : i32
    return %c0_i32, %c0_i32_0 : i32, i32
  }
  func.func @transform_9(%arg0: i32) -> (i32, i32) {
    %c0_i32 = arith.constant 0 : i32
    %c0_i32_0 = arith.constant 0 : i32
    return %c0_i32, %arg0 : i32, i32
  }
}

</mosaic_0001>

<bundles_post_ra>
// kernel: tpu_custom_call.1
= control target key start
LH: loop header
LB: loop body
LE: loop exit
PB: predicated region body
PF: predicated region fallthrough
CT: control target
= control target key end

     0   :  { %vm49_vm0 = vcmask 130048   ;;  %v492_v5 = vmov 0   ;;  %s593_s0 = inlined_call_operand.vmem [shape: f32[16,128], index: 0, kind: input, shape index: {}]   ;;  %s594_s1 = inlined_call_operand.vmem [shape: f32[12,16], index: 1, kind: input, shape index: {}]   ;;  %s595_s2 = inlined_call_operand.vmem [shape: f32[12,1], index: 2, kind: input, shape index: {}]   ;;  %s596_s3 = inlined_call_operand.vmem [shape: f32[14,12], index: 3, kind: input, shape index: {}]   ;;  %s597_s4 = inlined_call_operand.vmem [shape: f32[14,1], index: 4, kind: input, shape index: {}]   ;;  %s598_s5 = inlined_call_operand.vmem [shape: f32[8,14], index: 5, kind: input, shape index: {}]   ;;  %s599_s6 = inlined_call_operand.vmem [shape: f32[8,1], index: 6, kind: input, shape index: {}]   ;;  %s600_s7 = inlined_call_operand.vmem [shape: f32[8,8], index: 7, kind: input, shape index: {}]   ;;  %s601_s8 = inlined_call_operand.vmem [shape: f32[8,1], index: 8, kind: input, shape index: {}]   ;;  %s602_s9 = inlined_call_operand.hbm [shape: f32[8,128], index: 9, kind: output, shape index: {}]  }
   0x1   :  { %v34_v0 = vld [vmem:[%s593_s0 + $0x8] sm:$0xff]  ;;  %v33_v1 = vld [vmem:[%s593_s0] sm:$0xff]  ;;  %468 = vset.pattern.permute.xlu0 %v492_v5 }
   0x2   :  { %v35_v2 = vld [vmem:[%s594_s1] sm:$0xff]  ;;  %438 = vmatprep.subr.mxu0 %v34_v0  ;;  %v38_v3 = vld [vmem:[%s595_s2 + $0x8] sm:$0xf] }
   0x3   :  { %442 = vmatprep.mubr.msk.f32.mxu0 %vm49_vm0, %v35_v2  ;;  %439 = vmatpush3.msra.mxu0 %v34_v0  ;;  %v36_v4 = vld [vmem:[%s594_s1 + $0x8] sm:$0xf] }
   0x4   :  { %14 = vsyncpa [#allocation3], 0  ;;  %440 = vmatprep.subr.mxu0 %v33_v1  ;;  %46 = vperm.xlu0 %468, %v38_v3   ;;  %v37_v6 = vld [vmem:[%s595_s2] sm:$0xff]  ;;  %vm147_vm1 = vcmask 97280   ;;  %v136_v9 = vld [vmem:[%s597_s4 + $0x8] sm:$0x3f] }
   0x5   :  { %441 = vmatpush3.msra.mxu0 %v33_v1  ;;  %469 = vset.pattern.permute.xlu1 %v492_v5  ;;  %v236_v7 = vld [vmem:[%s599_s6] sm:$0xff]  ;;  %vm154_vm2 = vcmask 1043456   ;;  %v134_v20 = vld [vmem:[%s596_s3 + $0x8] sm:$0x3f]  ;;  %v493_v21 = vmov 0.0   ;;  %vm494_vm3 = vmmov 0  }
   0x6   :  { %443 = vmatmul.mubr.msk.f32.vlgmr.msra.gmra.mxu0 %vm49_vm0, %v36_v4  ;;  %v133_v8 = vld [vmem:[%s596_s3] sm:$0xff]  ;;  %144 = vperm.xlu1 %469, %v136_v9   ;;  %vm246_vm4 = vcmask 1045504   ;;  %vm242_vm5 = vcmask 113664   ;;  %vm328_vm6 = vcmask 64512   ;;  %s495_s30 = smov [#allocation2]  }
   0x7   :  { %449 = vmatprep.mubr.msk.f32.mxu1 %vm147_vm1, %v133_v8  ;;  %v135_v10 = vld [vmem:[%s597_s4] sm:$0xff]  ;;  %452 = vmatprep.subr.mxu0 %v493_v21  ;;  %s409_s10 = sshll.u32 %s495_s30, 4  ;;  %s410_s10 = int_to_ptr.vmem [resolvable:$true] %s409_s10 }
   0x8   :  { %41 = vperm.xlu0 %468, %v37_v6   ;;  %v322_v11 = vld [vmem:[%s601_s8] sm:$0xff]  ;;  %456 = vmatprep.mubr.msk.f32.mxu0 %vm494_vm3, %v493_v21  ;;  %p475_p1 = scmp.lt.s32.totalorder %s410_s10, %s410_s10 }
   0x9   :  { %v235_v30 = vld [vmem:[%s598_s5] sm:$0xff]  ;;  %s470_s5 = scalar_lea.vmem %s410_s10, 128 }
   0xa   :  { %139 = vperm.xlu1 %469, %v135_v10   ;;  %v321_v36 = vld [vmem:[%s600_s7] sm:$0xff]  ;;  %p471_p0 = scmp.ne.s32.totalorder %s410_s10, %s470_s5  ;;  %p476_p2 = scmp.lt.s32.totalorder %s470_s5, %s470_s5 }
   0xc   :  { %239 = vperm.xlu0 %468, %v236_v7   ;;  %p477_p3 = por %p476_p2, %p475_p1 }
   0xe   :  { %325 = vperm.xlu1 %469, %v322_v11   ;;  %p478_p4 = pnand %p477_p3, %p471_p0 }
  0x7f   :  { %v47_v12 = vpop.permute.xlu0 %46 }
  0x81   :  { %v145_v22 = vpop.permute.xlu1 %144 }
  0x83   :  { %v42_v15 = vpop.permute.xlu0 %41 }
  0x85   :  { %v140_v25 = vpop.permute.xlu1 %139 }
  0x87   :  { %v240_v31 = vpop.permute.xlu0 %239 }
  0x89   :  { %v326_v37 = vpop.permute.xlu1 %325 }
  0xc6   :  { %v444_v13 = vpop.f32.mrf.mxu0 }
  0xc7   :  { %v128_v14 = vadd.f32 %v444_v13, %v47_v12 }
  0xc8   :  { %v122_v16 = vpop.f32.mrf.mxu0 }
  0xc9   :  { %v132_v17 = vmax.f32 %v128_v14, 0.0  ;;  %v123_v18 = vadd.f32 %v122_v16, %v42_v15 }
  0xcb   :  { %v131_v19 = vmax.f32 %v123_v18, 0.0  ;;  %445 = vmatprep.subr.msk.mxu1 %vm154_vm2, %v132_v17 }
  0xcc   :  { %446 = vmatpush3.msk.msra.mxu1 %vm154_vm2, %v132_v17 }
  0xcd   :  { %447 = vmatprep.subr.mxu1 %v131_v19 }
  0xce   :  { %448 = vmatpush3.msra.mxu1 %v131_v19 }
  0xcf   :  { %450 = vmatmul.mubr.msk.f32.vlgmr.msra.gmra.mxu1 %vm147_vm1, %v134_v20  ;;  %459 = vmatprep.subr.mxu1 %v493_v21 }
  0xd0   :  { %461 = vmatprep.mubr.msk.f32.mxu1 %vm494_vm3, %v493_v21 }
 0x18f   :  { %v451_v23 = vpop.f32.mrf.mxu1 }
 0x190   :  { %v230_v24 = vadd.f32 %v451_v23, %v145_v22 }
 0x191   :  { %v224_v26 = vpop.f32.mrf.mxu1 }
 0x192   :  { %v234_v27 = vmax.f32 %v230_v24, 0.0  ;;  %v225_v28 = vadd.f32 %v224_v26, %v140_v25 }
 0x194   :  { %v233_v29 = vmax.f32 %v225_v28, 0.0  ;;  %453 = vmatpush3.msk.msra.mxu0 %vm246_vm4, %v234_v27 }
 0x195   :  { %454 = vmatprep.subr.mxu0 %v493_v21 }
 0x196   :  { %455 = vmatpush3.msra.mxu0 %v233_v29 }
 0x197   :  { %457 = vmatmul.mubr.msk.f32.vlgmr.msra.gmra.mxu0 %vm242_vm5, %v235_v30 }
 0x257   :  { %v316_v32 = vpop.f32.mrf.mxu0 }
 0x258   :  { %v317_v33 = vadd.f32 %v316_v32, %v240_v31 }
 0x259   :  { %v458_v34 = vpop.f32.mrf.mxu0 }
 0x25a   :  { %v320_v35 = vmax.f32 %v317_v33, 0.0 }
 0x25c   :  { %460 = vmatpush3.msra.mxu1 %v320_v35 }
 0x25d   :  { %462 = vmatmul.mubr.msk.f32.vlgmr.msra.gmra.mxu1 %vm328_vm6, %v321_v36 }
 0x31d   :  { %v398_v38 = vpop.f32.mrf.mxu1 }
 0x31e   :  { %v399_v39 = vadd.f32 %v398_v38, %v326_v37 }
 0x31f   :  { %v463_v40 = vpop.f32.mrf.mxu1 }
 0x320   :  { %402 = vst [vmem:[#allocation2] sm:$0xff] %v399_v39 }
 0x321   :  { %481 = shalt.err (!%p478_p4)
}
 0x322   :  { %412 = dma.vmem_to_hbm [thread:$0]  %s410_s10, 128, %s602_s9, [#allocation3]  }
 0x323   :  { %490 = dma.done.wait [#allocation3], 128  }
 0x324   :  { %491 = vsyncadd [#allocation3], 4294967168 }
 0x325   :  { %416 = vsyncpa [#allocation3], 1 }

// kernel: tpu_custom_call.1
= control target key start
LH: loop header
LB: loop body
LE: loop exit
PB: predicated region body
PF: predicated region fallthrough
CT: control target
= control target key end

     0   :  { %vm49_vm0 = vcmask 130048   ;;  %v492_v5 = vmov 0   ;;  %s593_s0 = inlined_call_operand.vmem [shape: f32[16,128], index: 0, kind: input, shape index: {}]   ;;  %s594_s1 = inlined_call_operand.vmem [shape: f32[12,16], index: 1, kind: input, shape index: {}]   ;;  %s595_s2 = inlined_call_operand.vmem [shape: f32[12,1], index: 2, kind: input, shape index: {}]   ;;  %s596_s3 = inlined_call_operand.vmem [shape: f32[14,12], index: 3, kind: input, shape index: {}]   ;;  %s597_s4 = inlined_call_operand.vmem [shape: f32[14,1], index: 4, kind: input, shape index: {}]   ;;  %s598_s5 = inlined_call_operand.vmem [shape: f32[8,14], index: 5, kind: input, shape index: {}]   ;;  %s599_s6 = inlined_call_operand.vmem [shape: f32[8,1], index: 6, kind: input, shape index: {}]   ;;  %s600_s7 = inlined_call_operand.vmem [shape: f32[8,8], index: 7, kind: input, shape index: {}]   ;;  %s601_s8 = inlined_call_operand.vmem [shape: f32[8,1], index: 8, kind: input, shape index: {}]   ;;  %s602_s9 = inlined_call_operand.hbm [shape: f32[8,128], index: 9, kind: output, shape index: {}]  }
   0x1   :  { %v34_v0 = vld [vmem:[%s593_s0 + $0x8] sm:$0xff]  ;;  %v33_v1 = vld [vmem:[%s593_s0] sm:$0xff]  ;;  %468 = vset.pattern.permute.xlu0 %v492_v5 }
   0x2   :  { %v35_v2 = vld [vmem:[%s594_s1] sm:$0xff]  ;;  %438 = vmatprep.subr.mxu0 %v34_v0  ;;  %v38_v3 = vld [vmem:[%s595_s2 + $0x8] sm:$0xf] }
   0x3   :  { %442 = vmatprep.mubr.msk.f32.mxu0 %vm49_vm0, %v35_v2  ;;  %439 = vmatpush3.msra.mxu0 %v34_v0  ;;  %v36_v4 = vld [vmem:[%s594_s1 + $0x8] sm:$0xf] }
   0x4   :  { %14 = vsyncpa [#allocation3], 0  ;;  %440 = vmatprep.subr.mxu0 %v33_v1  ;;  %46 = vperm.xlu0 %468, %v38_v3   ;;  %v37_v6 = vld [vmem:[%s595_s2] sm:$0xff]  ;;  %vm147_vm1 = vcmask 97280   ;;  %v136_v9 = vld [vmem:[%s597_s4 + $0x8] sm:$0x3f] }
   0x5   :  { %441 = vmatpush3.msra.mxu0 %v33_v1  ;;  %469 = vset.pattern.permute.xlu1 %v492_v5  ;;  %v236_v7 = vld [vmem:[%s599_s6] sm:$0xff]  ;;  %vm154_vm2 = vcmask 1043456   ;;  %v134_v20 = vld [vmem:[%s596_s3 + $0x8] sm:$0x3f]  ;;  %v493_v21 = vmov 0.0   ;;  %vm494_vm3 = vmmov 0  }
   0x6   :  { %443 = vmatmul.mubr.msk.f32.vlgmr.msra.gmra.mxu0 %vm49_vm0, %v36_v4  ;;  %v133_v8 = vld [vmem:[%s596_s3] sm:$0xff]  ;;  %144 = vperm.xlu1 %469, %v136_v9   ;;  %vm246_vm4 = vcmask 1045504   ;;  %vm242_vm5 = vcmask 113664   ;;  %vm328_vm6 = vcmask 64512   ;;  %s495_s30 = smov [#allocation2]  }
   0x7   :  { %449 = vmatprep.mubr.msk.f32.mxu1 %vm147_vm1, %v133_v8  ;;  %v135_v10 = vld [vmem:[%s597_s4] sm:$0xff]  ;;  %452 = vmatprep.subr.mxu0 %v493_v21  ;;  %s409_s10 = sshll.u32 %s495_s30, 4  ;;  %s410_s10 = int_to_ptr.vmem [resolvable:$true] %s409_s10 }
   0x8   :  { %41 = vperm.xlu0 %468, %v37_v6   ;;  %v322_v11 = vld [vmem:[%s601_s8] sm:$0xff]  ;;  %456 = vmatprep.mubr.msk.f32.mxu0 %vm494_vm3, %v493_v21  ;;  %p475_p1 = scmp.lt.s32.totalorder %s410_s10, %s410_s10 }
   0x9   :  { %v235_v30 = vld [vmem:[%s598_s5] sm:$0xff]  ;;  %s470_s5 = scalar_lea.vmem %s410_s10, 128 }
   0xa   :  { %139 = vperm.xlu1 %469, %v135_v10   ;;  %v321_v36 = vld [vmem:[%s600_s7] sm:$0xff]  ;;  %p471_p0 = scmp.ne.s32.totalorder %s410_s10, %s470_s5  ;;  %p476_p2 = scmp.lt.s32.totalorder %s470_s5, %s470_s5 }
   0xc   :  { %239 = vperm.xlu0 %468, %v236_v7   ;;  %p477_p3 = por %p476_p2, %p475_p1 }
   0xe   :  { %325 = vperm.xlu1 %469, %v322_v11   ;;  %p478_p4 = pnand %p477_p3, %p471_p0 }
  0x7f   :  { %v47_v12 = vpop.permute.xlu0 %46 }
  0x81   :  { %v145_v22 = vpop.permute.xlu1 %144 }
  0x83   :  { %v42_v15 = vpop.permute.xlu0 %41 }
  0x85   :  { %v140_v25 = vpop.permute.xlu1 %139 }
  0x87   :  { %v240_v31 = vpop.permute.xlu0 %239 }
  0x89   :  { %v326_v37 = vpop.permute.xlu1 %325 }
  0xc6   :  { %v444_v13 = vpop.f32.mrf.mxu0 }
  0xc7   :  { %v128_v14 = vadd.f32 %v444_v13, %v47_v12 }
  0xc8   :  { %v122_v16 = vpop.f32.mrf.mxu0 }
  0xc9   :  { %v132_v17 = vmax.f32 %v128_v14, 0.0  ;;  %v123_v18 = vadd.f32 %v122_v16, %v42_v15 }
  0xcb   :  { %v131_v19 = vmax.f32 %v123_v18, 0.0  ;;  %445 = vmatprep.subr.msk.mxu1 %vm154_vm2, %v132_v17 }
  0xcc   :  { %446 = vmatpush3.msk.msra.mxu1 %vm154_vm2, %v132_v17 }
  0xcd   :  { %447 = vmatprep.subr.mxu1 %v131_v19 }
  0xce   :  { %448 = vmatpush3.msra.mxu1 %v131_v19 }
  0xcf   :  { %450 = vmatmul.mubr.msk.f32.vlgmr.msra.gmra.mxu1 %vm147_vm1, %v134_v20  ;;  %459 = vmatprep.subr.mxu1 %v493_v21 }
  0xd0   :  { %461 = vmatprep.mubr.msk.f32.mxu1 %vm494_vm3, %v493_v21 }
 0x18f   :  { %v451_v23 = vpop.f32.mrf.mxu1 }
 0x190   :  { %v230_v24 = vadd.f32 %v451_v23, %v145_v22 }
 0x191   :  { %v224_v26 = vpop.f32.mrf.mxu1 }
 0x192   :  { %v234_v27 = vmax.f32 %v230_v24, 0.0  ;;  %v225_v28 = vadd.f32 %v224_v26, %v140_v25 }
 0x194   :  { %v233_v29 = vmax.f32 %v225_v28, 0.0  ;;  %453 = vmatpush3.msk.msra.mxu0 %vm246_vm4, %v234_v27 }
 0x195   :  { %454 = vmatprep.subr.mxu0 %v493_v21 }
 0x196   :  { %455 = vmatpush3.msra.mxu0 %v233_v29 }
 0x197   :  { %457 = vmatmul.mubr.msk.f32.vlgmr.msra.gmra.mxu0 %vm242_vm5, %v235_v30 }
 0x257   :  { %v316_v32 = vpop.f32.mrf.mxu0 }
 0x258   :  { %v317_v33 = vadd.f32 %v316_v32, %v240_v31 }
 0x259   :  { %v458_v34 = vpop.f32.mrf.mxu0 }
 0x25a   :  { %v320_v35 = vmax.f32 %v317_v33, 0.0 }
 0x25c   :  { %460 = vmatpush3.msra.mxu1 %v320_v35 }
 0x25d   :  { %462 = vmatmul.mubr.msk.f32.vlgmr.msra.gmra.mxu1 %vm328_vm6, %v321_v36 }
 0x31d   :  { %v398_v38 = vpop.f32.mrf.mxu1 }
 0x31e   :  { %v399_v39 = vadd.f32 %v398_v38, %v326_v37 }
 0x31f   :  { %v463_v40 = vpop.f32.mrf.mxu1 }
 0x320   :  { %402 = vst [vmem:[#allocation2] sm:$0xff] %v399_v39 }
 0x321   :  { %481 = shalt.err (!%p478_p4)
}
 0x322   :  { %412 = dma.vmem_to_hbm [thread:$0]  %s410_s10, 128, %s602_s9, [#allocation3]  }
 0x323   :  { %490 = dma.done.wait [#allocation3], 128  }
 0x324   :  { %491 = vsyncadd [#allocation3], 4294967168 }
 0x325   :  { %416 = vsyncpa [#allocation3], 1 }

</bundles_post_ra>
